<compile_context>
chip_gen: v5e
topology: v5e:2x2
jax: 0.10.0
libtpu: 0.0.40
codegen_flags: <defaults>
</compile_context>

<pallas_src>
import functools

import jax
import jax.numpy as jnp
from jax.experimental import pallas as pl
from jax.experimental.pallas import tpu as pltpu


def _sigmoid(x):
    # sigmoid(x) = 0.5 * (tanh(x/2) + 1): one EUP op + two VALU ops, stable, exact.
    return 0.5 * (jnp.tanh(0.5 * x) + 1.0)


def _dense_sigmoid(h, w, b, tb):
    """sigmoid(W @ h + b) with h: [n_in, TB], w: [n_out, n_in], b: [n_out, 1].

    Unrolled VPU broadcast-FMA chain (K <= 8), split into two independent
    partial sums (even/odd k) to break the serial accumulator dependence.
    """
    n_out, n_in = w.shape
    acc0 = jnp.broadcast_to(b, (n_out, tb))      # even-k chain, seeded with the bias
    acc1 = w[:, 1:2] * h[1:2, :]                 # odd-k chain
    for k in range(0, n_in, 2):
        acc0 = acc0 + w[:, k:k + 1] * h[k:k + 1, :]
    for k in range(3, n_in, 2):
        acc1 = acc1 + w[:, k:k + 1] * h[k:k + 1, :]
    return _sigmoid(acc0 + acc1)


def mlp_kernel(x_ref, p_ref, o_ref):
    tb = x_ref.shape[1]
    # Packed, VMEM-resident parameters: a single (8, 128) f32 tile.
    p = p_ref[...]
    w1, b1 = p[0:6, 0:8], p[0:6, 8:9]
    w2, b2 = p[0:4, 16:22], p[0:4, 22:23]
    w3, b3 = p[0:1, 24:28], p[0:1, 28:29]

    h = x_ref[...].astype(jnp.float32)           # [8, TB]: batch on lanes, f32 math
    h = _dense_sigmoid(h, w1, b1, tb)            # [6, TB]
    h = _dense_sigmoid(h, w2, b2, tb)            # [4, TB]
    h = _dense_sigmoid(h, w3, b3, tb)            # [1, TB]
    o_ref[...] = h.astype(o_ref.dtype)           # lane-dense (1, TB) store


def _pack_params(w1, b1, w2, b2, w3, b3):
    """All 87 parameter scalars in one (8, 128) f32 tile (one DMA, stays resident)."""
    p = jnp.zeros((8, 128), jnp.float32)
    p = p.at[0:6, 0:8].set(w1.astype(jnp.float32))
    p = p.at[0:6, 8:9].set(b1.astype(jnp.float32).reshape(6, 1))
    p = p.at[0:4, 16:22].set(w2.astype(jnp.float32))
    p = p.at[0:4, 22:23].set(b2.astype(jnp.float32).reshape(4, 1))
    p = p.at[0:1, 24:28].set(w3.astype(jnp.float32))
    p = p.at[0:1, 28:29].set(b3.astype(jnp.float32).reshape(1, 1))
    return p


@functools.partial(jax.jit, static_argnames=("tb", "feed_dtype"))
def mlp_forward(x, w1, b1, w2, b2, w3, b3, *, tb=None, feed_dtype=jnp.bfloat16):
    """x: [B, 8] (PyTorch Linear convention). Returns [B, 1] float32."""
    B, f_in = x.shape
    assert f_in == 8
    if tb is None:
        # ~2 grid steps for small B (keeps both v7x TensorCores busy), 8192-lane
        # tiles for large B. VMEM is a non-issue: bf16 (8, 8192) block is 128 KiB.
        tb = min(8192, max(128, pl.cdiv(B, 2 * 128) * 128))
    assert tb % 128 == 0
    grid = pl.cdiv(B, tb)

    # Single fused producer: cast (bf16 halves the HBM read) + transpose so batch
    # lands on the lane axis. No pad pass: ragged tail handled by OOB masking.
    xt = x.astype(feed_dtype).T                  # [8, B]
    params = _pack_params(w1, b1, w2, b2, w3, b3)

    out = pl.pallas_call(
        mlp_kernel,
        out_shape=jax.ShapeDtypeStruct((1, B), jnp.float32),
        grid_spec=pltpu.PrefetchScalarGridSpec(
            num_scalar_prefetch=0,
            grid=(grid,),
            in_specs=[
                pl.BlockSpec((8, tb), lambda i: (0, i)),       # lane tile of inputs
                pl.BlockSpec((8, 128), lambda i: (0, 0)),      # resident packed params
            ],
            out_specs=pl.BlockSpec((1, tb), lambda i: (0, i)),  # lane-dense output
        ),
        compiler_params=pltpu.CompilerParams(
            dimension_semantics=("parallel",)),                # megacore on v7x
    )(xt, params)                                              # [1, B]

    return out.reshape(B, 1)


def init_params(key):
    # torch.nn.Linear default init: U(-1/sqrt(fan_in), +1/sqrt(fan_in)) for W and b.
    keys = jax.random.split(key, 6)

    def lin(kw, kb, fan_in, fan_out):
        bound = 1.0 / jnp.sqrt(jnp.float32(fan_in))
        w = jax.random.uniform(kw, (fan_out, fan_in), jnp.float32, -bound, bound)
        b = jax.random.uniform(kb, (fan_out,), jnp.float32, -bound, bound)
        return w, b

    w1, b1 = lin(keys[0], keys[1], 8, 6)
    w2, b2 = lin(keys[2], keys[3], 6, 4)
    w3, b3 = lin(keys[4], keys[5], 4, 1)
    return w1, b1, w2, b2, w3, b3


if __name__ == "__main__":
    key = jax.random.PRNGKey(0)
    kp, kx = jax.random.split(key)
    w1, b1, w2, b2, w3, b3 = init_params(kp)

    # Batch deliberately not a multiple of the lane tile: exercises the ragged
    # (OOB-masked) tail block and a 2-step "parallel" grid.
    B = 1000
    x = jax.random.normal(kx, (B, 8), jnp.float32)

    out = jax.block_until_ready(mlp_forward(x, w1, b1, w2, b2, w3, b3))  # bf16 feed
    assert out.shape == (B, 1)

    # Plain-JAX reference with PyTorch semantics: y = sigmoid(x @ W^T + b).
    # Explicit broadcast-sum keeps the reference in exact f32 (independent of
    # XLA's default matmul precision on TPU).
    def ref_fwd(xr):
        h = xr
        for w, b in ((w1, b1), (w2, b2), (w3, b3)):
            h = jax.nn.sigmoid((h[:, None, :] * w[None, :, :]).sum(-1) + b)
        return h

    # Same bf16-rounded input -> must match tightly (tanh-form sigmoid is exact).
    xq = x.astype(jnp.bfloat16).astype(jnp.float32)
    assert jnp.allclose(out, ref_fwd(xq), atol=1e-4), "mismatch vs bf16-input reference"
    # Full-precision reference: only the bf16 input quantization differs.
    assert jnp.allclose(out, ref_fwd(x), atol=5e-3), "mismatch vs f32 reference"

    # f32 feed path must match the full-precision reference tightly.
    out32 = jax.block_until_ready(
        mlp_forward(x, w1, b1, w2, b2, w3, b3, feed_dtype=jnp.float32))
    assert jnp.allclose(out32, ref_fwd(x), atol=1e-4), "mismatch (f32 feed)"

    print("KERNEL_OK")
</pallas_src>

<mosaic_0001>
module attributes {stable_mosaic.version = 11 : i64} {
  func.func @mlp_kernel(%arg0: i32, %arg1: memref<8x512xbf16, #tpu.memory_space<vmem>>, %arg2: memref<8x128xf32, #tpu.memory_space<vmem>>, %arg3: memref<1x512xf32, #tpu.memory_space<vmem>>) attributes {dimension_semantics = [#tpu.dimension_semantics<parallel>], iteration_bounds = array<i64: 2>, scalar_prefetch = 0 : i64, scratch_operands = 0 : i64, tpu.core_type = #tpu.core_type<tc>, window_params = [{transform_indices = @transform_0, window_bounds = array<i64: 8, 512>}, {pipeline_mode = #tpu.pipeline_mode<synchronous>, transform_indices = @transform_1, window_bounds = array<i64: 8, 128>}, {transform_indices = @transform_2, window_bounds = array<i64: 1, 512>}]} {
    %c0 = arith.constant 0 : index
    %c0_0 = arith.constant 0 : index
    %0 = vector.load %arg2[%c0, %c0_0] : memref<8x128xf32, #tpu.memory_space<vmem>>, vector<8x128xf32>
    %1 = vector.extract_strided_slice %0 {offsets = [0, 0], sizes = [6, 8], strides = [1, 1]} : vector<8x128xf32> to vector<6x8xf32>
    %2 = vector.extract_strided_slice %0 {offsets = [0, 8], sizes = [6, 1], strides = [1, 1]} : vector<8x128xf32> to vector<6x1xf32>
    %3 = vector.extract_strided_slice %0 {offsets = [0, 16], sizes = [4, 6], strides = [1, 1]} : vector<8x128xf32> to vector<4x6xf32>
    %4 = vector.extract_strided_slice %0 {offsets = [0, 22], sizes = [4, 1], strides = [1, 1]} : vector<8x128xf32> to vector<4x1xf32>
    %5 = vector.extract_strided_slice %0 {offsets = [0, 24], sizes = [1, 4], strides = [1, 1]} : vector<8x128xf32> to vector<1x4xf32>
    %6 = vector.extract_strided_slice %0 {offsets = [0, 28], sizes = [1, 1], strides = [1, 1]} : vector<8x128xf32> to vector<1x1xf32>
    %c0_1 = arith.constant 0 : index
    %c0_2 = arith.constant 0 : index
    %7 = vector.load %arg1[%c0_1, %c0_2] : memref<8x512xbf16, #tpu.memory_space<vmem>>, vector<8x512xbf16>
    %8 = arith.extf %7 : vector<8x512xbf16> to vector<8x512xf32>
    %9 = vector.shape_cast %2 : vector<6x1xf32> to vector<6x1xf32>
    %10 = vector.broadcast %9 : vector<6x1xf32> to vector<6x512xf32>
    %11 = vector.extract_strided_slice %1 {offsets = [0, 1], sizes = [6, 1], strides = [1, 1]} : vector<6x8xf32> to vector<6x1xf32>
    %12 = vector.extract_strided_slice %8 {offsets = [1, 0], sizes = [1, 512], strides = [1, 1]} : vector<8x512xf32> to vector<1x512xf32>
    %13 = vector.broadcast %11 : vector<6x1xf32> to vector<6x512xf32>
    %14 = vector.broadcast %12 : vector<1x512xf32> to vector<6x512xf32>
    %15 = arith.mulf %13, %14 : vector<6x512xf32>
    %16 = vector.extract_strided_slice %1 {offsets = [0, 0], sizes = [6, 1], strides = [1, 1]} : vector<6x8xf32> to vector<6x1xf32>
    %17 = vector.extract_strided_slice %8 {offsets = [0, 0], sizes = [1, 512], strides = [1, 1]} : vector<8x512xf32> to vector<1x512xf32>
    %18 = vector.broadcast %16 : vector<6x1xf32> to vector<6x512xf32>
    %19 = vector.broadcast %17 : vector<1x512xf32> to vector<6x512xf32>
    %20 = arith.mulf %18, %19 : vector<6x512xf32>
    %21 = arith.addf %10, %20 : vector<6x512xf32>
    %22 = vector.extract_strided_slice %1 {offsets = [0, 2], sizes = [6, 1], strides = [1, 1]} : vector<6x8xf32> to vector<6x1xf32>
    %23 = vector.extract_strided_slice %8 {offsets = [2, 0], sizes = [1, 512], strides = [1, 1]} : vector<8x512xf32> to vector<1x512xf32>
    %24 = vector.broadcast %22 : vector<6x1xf32> to vector<6x512xf32>
    %25 = vector.broadcast %23 : vector<1x512xf32> to vector<6x512xf32>
    %26 = arith.mulf %24, %25 : vector<6x512xf32>
    %27 = arith.addf %21, %26 : vector<6x512xf32>
    %28 = vector.extract_strided_slice %1 {offsets = [0, 4], sizes = [6, 1], strides = [1, 1]} : vector<6x8xf32> to vector<6x1xf32>
    %29 = vector.extract_strided_slice %8 {offsets = [4, 0], sizes = [1, 512], strides = [1, 1]} : vector<8x512xf32> to vector<1x512xf32>
    %30 = vector.broadcast %28 : vector<6x1xf32> to vector<6x512xf32>
    %31 = vector.broadcast %29 : vector<1x512xf32> to vector<6x512xf32>
    %32 = arith.mulf %30, %31 : vector<6x512xf32>
    %33 = arith.addf %27, %32 : vector<6x512xf32>
    %34 = vector.extract_strided_slice %1 {offsets = [0, 6], sizes = [6, 1], strides = [1, 1]} : vector<6x8xf32> to vector<6x1xf32>
    %35 = vector.extract_strided_slice %8 {offsets = [6, 0], sizes = [1, 512], strides = [1, 1]} : vector<8x512xf32> to vector<1x512xf32>
    %36 = vector.broadcast %34 : vector<6x1xf32> to vector<6x512xf32>
    %37 = vector.broadcast %35 : vector<1x512xf32> to vector<6x512xf32>
    %38 = arith.mulf %36, %37 : vector<6x512xf32>
    %39 = arith.addf %33, %38 : vector<6x512xf32>
    %40 = vector.extract_strided_slice %1 {offsets = [0, 3], sizes = [6, 1], strides = [1, 1]} : vector<6x8xf32> to vector<6x1xf32>
    %41 = vector.extract_strided_slice %8 {offsets = [3, 0], sizes = [1, 512], strides = [1, 1]} : vector<8x512xf32> to vector<1x512xf32>
    %42 = vector.broadcast %40 : vector<6x1xf32> to vector<6x512xf32>
    %43 = vector.broadcast %41 : vector<1x512xf32> to vector<6x512xf32>
    %44 = arith.mulf %42, %43 : vector<6x512xf32>
    %45 = arith.addf %15, %44 : vector<6x512xf32>
    %46 = vector.extract_strided_slice %1 {offsets = [0, 5], sizes = [6, 1], strides = [1, 1]} : vector<6x8xf32> to vector<6x1xf32>
    %47 = vector.extract_strided_slice %8 {offsets = [5, 0], sizes = [1, 512], strides = [1, 1]} : vector<8x512xf32> to vector<1x512xf32>
    %48 = vector.broadcast %46 : vector<6x1xf32> to vector<6x512xf32>
    %49 = vector.broadcast %47 : vector<1x512xf32> to vector<6x512xf32>
    %50 = arith.mulf %48, %49 : vector<6x512xf32>
    %51 = arith.addf %45, %50 : vector<6x512xf32>
    %52 = vector.extract_strided_slice %1 {offsets = [0, 7], sizes = [6, 1], strides = [1, 1]} : vector<6x8xf32> to vector<6x1xf32>
    %53 = vector.extract_strided_slice %8 {offsets = [7, 0], sizes = [1, 512], strides = [1, 1]} : vector<8x512xf32> to vector<1x512xf32>
    %54 = vector.broadcast %52 : vector<6x1xf32> to vector<6x512xf32>
    %55 = vector.broadcast %53 : vector<1x512xf32> to vector<6x512xf32>
    %56 = arith.mulf %54, %55 : vector<6x512xf32>
    %57 = arith.addf %51, %56 : vector<6x512xf32>
    %58 = arith.addf %39, %57 : vector<6x512xf32>
    %cst = arith.constant 5.000000e-01 : f32
    %59 = vector.broadcast %cst : f32 to vector<6x512xf32>
    %60 = arith.mulf %59, %58 : vector<6x512xf32>
    %61 = math.tanh %60 : vector<6x512xf32>
    %cst_3 = arith.constant 1.000000e+00 : f32
    %62 = vector.broadcast %cst_3 : f32 to vector<6x512xf32>
    %63 = arith.addf %61, %62 : vector<6x512xf32>
    %cst_4 = arith.constant 5.000000e-01 : f32
    %64 = vector.broadcast %cst_4 : f32 to vector<6x512xf32>
    %65 = arith.mulf %64, %63 : vector<6x512xf32>
    %66 = vector.shape_cast %4 : vector<4x1xf32> to vector<4x1xf32>
    %67 = vector.broadcast %66 : vector<4x1xf32> to vector<4x512xf32>
    %68 = vector.extract_strided_slice %3 {offsets = [0, 1], sizes = [4, 1], strides = [1, 1]} : vector<4x6xf32> to vector<4x1xf32>
    %69 = vector.extract_strided_slice %65 {offsets = [1, 0], sizes = [1, 512], strides = [1, 1]} : vector<6x512xf32> to vector<1x512xf32>
    %70 = vector.broadcast %68 : vector<4x1xf32> to vector<4x512xf32>
    %71 = vector.broadcast %69 : vector<1x512xf32> to vector<4x512xf32>
    %72 = arith.mulf %70, %71 : vector<4x512xf32>
    %73 = vector.extract_strided_slice %3 {offsets = [0, 0], sizes = [4, 1], strides = [1, 1]} : vector<4x6xf32> to vector<4x1xf32>
    %74 = vector.extract_strided_slice %65 {offsets = [0, 0], sizes = [1, 512], strides = [1, 1]} : vector<6x512xf32> to vector<1x512xf32>
    %75 = vector.broadcast %73 : vector<4x1xf32> to vector<4x512xf32>
    %76 = vector.broadcast %74 : vector<1x512xf32> to vector<4x512xf32>
    %77 = arith.mulf %75, %76 : vector<4x512xf32>
    %78 = arith.addf %67, %77 : vector<4x512xf32>
    %79 = vector.extract_strided_slice %3 {offsets = [0, 2], sizes = [4, 1], strides = [1, 1]} : vector<4x6xf32> to vector<4x1xf32>
    %80 = vector.extract_strided_slice %65 {offsets = [2, 0], sizes = [1, 512], strides = [1, 1]} : vector<6x512xf32> to vector<1x512xf32>
    %81 = vector.broadcast %79 : vector<4x1xf32> to vector<4x512xf32>
    %82 = vector.broadcast %80 : vector<1x512xf32> to vector<4x512xf32>
    %83 = arith.mulf %81, %82 : vector<4x512xf32>
    %84 = arith.addf %78, %83 : vector<4x512xf32>
    %85 = vector.extract_strided_slice %3 {offsets = [0, 4], sizes = [4, 1], strides = [1, 1]} : vector<4x6xf32> to vector<4x1xf32>
    %86 = vector.extract_strided_slice %65 {offsets = [4, 0], sizes = [1, 512], strides = [1, 1]} : vector<6x512xf32> to vector<1x512xf32>
    %87 = vector.broadcast %85 : vector<4x1xf32> to vector<4x512xf32>
    %88 = vector.broadcast %86 : vector<1x512xf32> to vector<4x512xf32>
    %89 = arith.mulf %87, %88 : vector<4x512xf32>
    %90 = arith.addf %84, %89 : vector<4x512xf32>
    %91 = vector.extract_strided_slice %3 {offsets = [0, 3], sizes = [4, 1], strides = [1, 1]} : vector<4x6xf32> to vector<4x1xf32>
    %92 = vector.extract_strided_slice %65 {offsets = [3, 0], sizes = [1, 512], strides = [1, 1]} : vector<6x512xf32> to vector<1x512xf32>
    %93 = vector.broadcast %91 : vector<4x1xf32> to vector<4x512xf32>
    %94 = vector.broadcast %92 : vector<1x512xf32> to vector<4x512xf32>
    %95 = arith.mulf %93, %94 : vector<4x512xf32>
    %96 = arith.addf %72, %95 : vector<4x512xf32>
    %97 = vector.extract_strided_slice %3 {offsets = [0, 5], sizes = [4, 1], strides = [1, 1]} : vector<4x6xf32> to vector<4x1xf32>
    %98 = vector.extract_strided_slice %65 {offsets = [5, 0], sizes = [1, 512], strides = [1, 1]} : vector<6x512xf32> to vector<1x512xf32>
    %99 = vector.broadcast %97 : vector<4x1xf32> to vector<4x512xf32>
    %100 = vector.broadcast %98 : vector<1x512xf32> to vector<4x512xf32>
    %101 = arith.mulf %99, %100 : vector<4x512xf32>
    %102 = arith.addf %96, %101 : vector<4x512xf32>
    %103 = arith.addf %90, %102 : vector<4x512xf32>
    %cst_5 = arith.constant 5.000000e-01 : f32
    %104 = vector.broadcast %cst_5 : f32 to vector<4x512xf32>
    %105 = arith.mulf %104, %103 : vector<4x512xf32>
    %106 = math.tanh %105 : vector<4x512xf32>
    %cst_6 = arith.constant 1.000000e+00 : f32
    %107 = vector.broadcast %cst_6 : f32 to vector<4x512xf32>
    %108 = arith.addf %106, %107 : vector<4x512xf32>
    %cst_7 = arith.constant 5.000000e-01 : f32
    %109 = vector.broadcast %cst_7 : f32 to vector<4x512xf32>
    %110 = arith.mulf %109, %108 : vector<4x512xf32>
    %111 = vector.shape_cast %6 : vector<1x1xf32> to vector<1x1xf32>
    %112 = vector.broadcast %111 : vector<1x1xf32> to vector<1x512xf32>
    %113 = vector.extract_strided_slice %5 {offsets = [0, 1], sizes = [1, 1], strides = [1, 1]} : vector<1x4xf32> to vector<1x1xf32>
    %114 = vector.extract_strided_slice %110 {offsets = [1, 0], sizes = [1, 512], strides = [1, 1]} : vector<4x512xf32> to vector<1x512xf32>
    %115 = vector.broadcast %113 : vector<1x1xf32> to vector<1x512xf32>
    %116 = arith.mulf %115, %114 : vector<1x512xf32>
    %117 = vector.extract_strided_slice %5 {offsets = [0, 0], sizes = [1, 1], strides = [1, 1]} : vector<1x4xf32> to vector<1x1xf32>
    %118 = vector.extract_strided_slice %110 {offsets = [0, 0], sizes = [1, 512], strides = [1, 1]} : vector<4x512xf32> to vector<1x512xf32>
    %119 = vector.broadcast %117 : vector<1x1xf32> to vector<1x512xf32>
    %120 = arith.mulf %119, %118 : vector<1x512xf32>
    %121 = arith.addf %112, %120 : vector<1x512xf32>
    %122 = vector.extract_strided_slice %5 {offsets = [0, 2], sizes = [1, 1], strides = [1, 1]} : vector<1x4xf32> to vector<1x1xf32>
    %123 = vector.extract_strided_slice %110 {offsets = [2, 0], sizes = [1, 512], strides = [1, 1]} : vector<4x512xf32> to vector<1x512xf32>
    %124 = vector.broadcast %122 : vector<1x1xf32> to vector<1x512xf32>
    %125 = arith.mulf %124, %123 : vector<1x512xf32>
    %126 = arith.addf %121, %125 : vector<1x512xf32>
    %127 = vector.extract_strided_slice %5 {offsets = [0, 3], sizes = [1, 1], strides = [1, 1]} : vector<1x4xf32> to vector<1x1xf32>
    %128 = vector.extract_strided_slice %110 {offsets = [3, 0], sizes = [1, 512], strides = [1, 1]} : vector<4x512xf32> to vector<1x512xf32>
    %129 = vector.broadcast %127 : vector<1x1xf32> to vector<1x512xf32>
    %130 = arith.mulf %129, %128 : vector<1x512xf32>
    %131 = arith.addf %116, %130 : vector<1x512xf32>
    %132 = arith.addf %126, %131 : vector<1x512xf32>
    %cst_8 = arith.constant 5.000000e-01 : f32
    %133 = vector.broadcast %cst_8 : f32 to vector<1x512xf32>
    %134 = arith.mulf %133, %132 : vector<1x512xf32>
    %135 = math.tanh %134 : vector<1x512xf32>
    %cst_9 = arith.constant 1.000000e+00 : f32
    %136 = vector.broadcast %cst_9 : f32 to vector<1x512xf32>
    %137 = arith.addf %135, %136 : vector<1x512xf32>
    %cst_10 = arith.constant 5.000000e-01 : f32
    %138 = vector.broadcast %cst_10 : f32 to vector<1x512xf32>
    %139 = arith.mulf %138, %137 : vector<1x512xf32>
    %c0_11 = arith.constant 0 : index
    %c0_12 = arith.constant 0 : index
    %140 = vector.load %arg3[%c0_11, %c0_12] : memref<1x512xf32, #tpu.memory_space<vmem>>, vector<1x512xf32>
    tpu.vector_store %arg3[%c0_11, %c0_12], %139 {strides = array<i32>} : memref<1x512xf32, #tpu.memory_space<vmem>>, vector<1x512xf32>,
    return
  }
  func.func @transform_0(%arg0: i32) -> (i32, i32) {
    %c0_i32 = arith.constant 0 : i32
    %c0_i32_0 = arith.constant 0 : i32
    return %c0_i32, %arg0 : i32, i32
  }
  func.func @transform_1(%arg0: i32) -> (i32, i32) {
    %c0_i32 = arith.constant 0 : i32
    %c0_i32_0 = arith.constant 0 : i32
    %c0_i32_1 = arith.constant 0 : i32
    return %c0_i32, %c0_i32_0 : i32, i32
  }
  func.func @transform_2(%arg0: i32) -> (i32, i32) {
    %c0_i32 = arith.constant 0 : i32
    %c0_i32_0 = arith.constant 0 : i32
    return %c0_i32, %arg0 : i32, i32
  }
}

</mosaic_0001>

<bundles_post_ra>
// kernel: mlp_forward.1
= control target key start
LH: loop header
LB: loop body
LE: loop exit
PB: predicated region body
PF: predicated region fallthrough
CT: control target
= control target key end

     0   :  { %7 = vsyncpa [#allocation3], 0  ;;  %s1014_s0 = inlined_call_operand.vmem [shape: bf16[8,1000], index: 0, kind: input, shape index: {}]   ;;  %s1015_s1 = inlined_call_operand.vmem [shape: f32[8,128], index: 1, kind: input, shape index: {}]   ;;  %s1016_s2 = inlined_call_operand.hbm [shape: f32[1,1000], index: 2, kind: output, shape index: {}]  }
   0x1   :  { %9 = vsyncpa [#allocation3 + $0x1], 0  ;;  %s824_s9 = smov 0   ;;  %s826_s10 = smov 0  }
   0x2   :  { %s828_s11 = smov 0   ;;  %s830_s12 = smov 0  }
   0x3 LB: > { %s606_s13 = sadd.s32 4294967295, %s786_s12   ;;  %s607_s14 = sadd.s32 4294967294, %s786_s12   ;;  %s786_s12 = sphi %s830_s12, %s1022_s12   ;;  %s782_s11 = sphi %s828_s11, %s1021_s11   ;;  %s778_s10 = sphi %s826_s10, %s1020_s10   ;;  %s774_s9 = sphi %s824_s9, %s1019_s9  }
   0x4   : > { %s847_s15 = sadd.s32 1, %s786_s12   ;;  %s69_s16 = sadd.s32 1, %s782_s11 }
   0x5   : > { %s66_s17 = ssub.s32 %s786_s12, %s847_s15  ;;  %p79_p0 = scmp.ne.s32.totalorder %s782_s11, %s778_s10 }
   0x6   : > { %p67_p1 = scmp.eq.s32.totalorder %s66_s17, 0  ;;  %p80_p2 = scmp.eq.s32.totalorder %s606_s13, 1 }
   0x7   : > { %p85_p3 = scmp.ne.s32.totalorder %s778_s10, %s774_s9  ;;  %p86_p4 = scmp.eq.s32.totalorder %s607_s14, 1 }
   0x8   : > { %s859_s18 = scalar_select %p67_p1, %s782_s11, %s69_s16  }
   0x9   : > { %p861_p5 = por %p80_p2, %p79_p0  ;;  %p865_p6 = por %p86_p4, %p85_p3 }
   0xa   : > { %p610_p7 = scmp.ge.s32.totalorder %s786_s12, 1  ;;  %p116_p8 = scmp.lt.s32.totalorder %s786_s12, 3 }
   0xc   : > { %p117_p9 = pnand %p610_p7, %p116_p8 }
   0xd   : > { %s899_s23 = sshll.u32 (!%p117_p9), %s606_s13, 2  ;;  %s135_s29 = sand.u32 (!%p117_p9), 1, %s778_s10  }
   0xe   : > { %120 = sbr.rel (%p117_p9) target bundleno = 245 (0xf5), region = 28  ;;  %p139_p10 = scmp.lt.s32.totalorder (!%p117_p9), %s899_s23, 7 }
   0xf   : > { %s611_s30 = sshll.u32 (!%p117_p9), %s135_s29, 2  ;;  %s543_s5 = scalar_lea.hbm (!%p117_p9), %s1016_s2, %s899_s23 }
  0x10   : > { %s137_s6 = scalar_lea.vmem (!%p117_p9), [#allocation2], %s611_s30  ;;  %s547_s8 = sshll.u32 (!%p117_p9), %s543_s5, 4  ;;  %s548_s8 = int_to_ptr.hbm [resolvable:$true] %s547_s8 }
  0x11   : > { %s545_s7 = sshll.u32 (!%p117_p9), %s137_s6, 4  ;;  %s533_s13 = scalar_lea.sflag (!%p117_p9), [#allocation3], %s135_s29  ;;  %s546_s7 = int_to_ptr.vmem [resolvable:$true] %s545_s7 }
  0x12   : > { %s738_s14 = sshra.s32 (!%p117_p9), %s548_s8, 4  ;;  %s744_s22 = scalar_lea.hbm (!%p117_p9), %s1016_s2, 8  ;;  %s739_s14 = int_to_ptr.hbm [resolvable:$true] %s738_s14 }
  0x13   : > { %v874_v0 = vld [vmem:[%s1015_s1] sm:$0xff]  ;;  %v788_v1 = vmov 0   ;;  %v789_v2 = vmov 8   ;;  %v790_v3 = vmov 3   ;;  %v791_v4 = vmov 2   ;;  %s140_s24 = scalar_select %p139_p10, %s899_s23, 7 }
  0x14   : > { %680 = vset.pattern.permute.xlu1 %v788_v1  ;;  %678 = vset.pattern.permute.xlu0 %v789_v2  ;;  %v792_v5 = vmov 1   ;;  %v793_v6 = vmov 4   ;;  %v794_v7 = vmov 5   ;;  %v795_v8 = vmov 7   ;;  %s740_s16 = scalar_lea.hbm %s739_s14, 4  ;;  %p745_p0 = scmp.lt.s32.totalorder %s739_s14, %s1016_s2 }
  0x15   : > { %170 = vperm.xlu1 %680, %v874_v0   ;;  %154 = vperm.xlu0 %678, %v874_v0   ;;  %v796_v9 = vmov 6   ;;  %v797_v10 = vmov 16   ;;  %v798_v11 = vmov 19   ;;  %v799_v12 = vmov 22   ;;  %s613_s25 = sshll.u32 %s140_s24, 2  ;;  %p741_p11 = scmp.ne.s32.totalorder %s739_s14, %s740_s16 }
  0x16   : > { %682 = vset.pattern.permute.xlu2 %v790_v3  ;;  %v800_v13 = vmov 17   ;;  %v801_v14 = vmov 25   ;;  %v802_v15 = vmov 18   ;;  %v803_v16 = vmov 20   ;;  %s142_s28 = scalar_lea.vmem %s1014_s0, %s613_s25  ;;  %p746_p1 = scmp.lt.s32.totalorder %s744_s22, %s740_s16 }
  0x17   : > { %234 = vperm.xlu2 %682, %v874_v0   ;;  %v804_v17 = vmov 27   ;;  %v805_v18 = vmov 21   ;;  %v806_v19 = vmov 24   ;;  %v807_v20 = vmov 28   ;;  %v146_v23 = vld [vmem:[%s142_s28] sm:$0xff]  ;;  %v147_v24 = vld [vmem:[%s142_s28 + $0x8] sm:$0xff]  ;;  %p742_p12 = pnand %p741_p11, %p861_p5 }
  0x18   : > { %v808_v21 = vmov 26   ;;  %v906_v25 = vunpack.c.l.bf16 %v146_v23  ;;  %v908_v26 = vunpack.c.h.bf16 %v146_v23  ;;  %v910_v27 = vunpack.c.l.bf16 %v147_v24  ;;  %p747_p2 = por %p746_p1, %p745_p0 }
  0x19   : > { %v912_v28 = vunpack.c.h.bf16 %v147_v24  ;;  %vm520_vm0 = vcmask 1040384   ;;  %vm522_vm1 = vcmask 1042434   ;;  %vm524_vm2 = vcmask 1041408   ;;  %p743_p13 = pneg %p742_p12 }
  0x1a   : > { %v237_v31 = vperm.slane %v906_v25, 3  ;;  %v238_v32 = vperm.slane %v908_v26, 3  ;;  %v239_v33 = vperm.slane %v910_v27, 3  ;;  %v173_v35 = vperm.slane %v906_v25, 0 }
  0x1b   : > { %v240_v34 = vperm.slane %v912_v28, 3  ;;  %v174_v36 = vperm.slane %v908_v26, 0  ;;  %v175_v37 = vperm.slane %v910_v27, 0  ;;  %v176_v38 = vperm.slane %v912_v28, 0  ;;  %p748_p3 = pnand %p747_p2, %p743_p13 }
  0x1c   : > { %v205_v40 = vperm.slane %v906_v25, 4  ;;  %v206_v41 = vperm.slane %v908_v26, 4  ;;  %v207_v42 = vperm.slane %v910_v27, 4  ;;  %v208_v43 = vperm.slane %v912_v28, 4 }
  0x1d   : > { %681 = vset.pattern.permute.xlu1 %v791_v4  ;;  %679 = vset.pattern.permute.xlu0 %v792_v5  ;;  %v189_v44 = vperm.slane %v906_v25, 2  ;;  %v190_v45 = vperm.slane %v908_v26, 2  ;;  %v191_v46 = vperm.slane %v910_v27, 2  ;;  %v192_v47 = vperm.slane %v912_v28, 2 }
  0x1e   : > { %186 = vperm.xlu1 %681, %v874_v0   ;;  %158 = vperm.xlu0 %679, %v874_v0   ;;  %v161_v48 = vperm.slane %v906_v25, 1  ;;  %v162_v49 = vperm.slane %v908_v26, 1  ;;  %v163_v50 = vperm.slane %v910_v27, 1  ;;  %v164_v51 = vperm.slane %v912_v28, 1 }
  0x1f   : > { %683 = vset.pattern.permute.xlu2 %v793_v6  ;;  %v221_v56 = vperm.slane %v906_v25, 6  ;;  %v222_v57 = vperm.slane %v908_v26, 6  ;;  %v223_v58 = vperm.slane %v910_v27, 6  ;;  %v224_v59 = vperm.slane %v912_v28, 6 }
  0x20   : > { %202 = vperm.xlu2 %683, %v874_v0   ;;  %v253_v1 = vperm.slane %v906_v25, 5  ;;  %v254_v2 = vperm.slane %v908_v26, 5  ;;  %v255_v3 = vperm.slane %v910_v27, 5  ;;  %v256_v4 = vperm.slane %v912_v28, 5 }
  0x26   : > { %684 = vset.pattern.permute.xlu1 %v794_v7  ;;  %686 = vset.pattern.permute.xlu0 %v795_v8 }
  0x27   : > { %250 = vperm.xlu1 %684, %v874_v0   ;;  %266 = vperm.xlu0 %686, %v874_v0  }
  0x28   : > { %685 = vset.pattern.permute.xlu2 %v796_v9 }
  0x29   : > { %218 = vperm.xlu2 %685, %v874_v0  }
  0x2f   : > { %687 = vset.pattern.permute.xlu1 %v797_v10  ;;  %691 = vset.pattern.permute.xlu0 %v798_v11 }
  0x30   : > { %318 = vperm.xlu1 %687, %v874_v0   ;;  %366 = vperm.xlu0 %691, %v874_v0  }
  0x31   : > { %688 = vset.pattern.permute.xlu2 %v799_v12 }
  0x32   : > { %302 = vperm.xlu2 %688, %v874_v0  }
  0x38   : > { %689 = vset.pattern.permute.xlu1 %v800_v13  ;;  %696 = vset.pattern.permute.xlu0 %v801_v14 }
  0x39   : > { %306 = vperm.xlu1 %689, %v874_v0   ;;  %422 = vperm.xlu0 %696, %v874_v0  }
  0x3a   : > { %690 = vset.pattern.permute.xlu2 %v802_v15 }
  0x3b   : > { %334 = vperm.xlu2 %690, %v874_v0  }
  0x41   : > { %692 = vset.pattern.permute.xlu1 %v803_v16  ;;  %699 = vset.pattern.permute.xlu0 %v804_v17 }
  0x42   : > { %350 = vperm.xlu1 %692, %v874_v0  }
  0x43   : > { %693 = vset.pattern.permute.xlu2 %v805_v18 }
  0x44   : > { %382 = vperm.xlu2 %693, %v874_v0  }
  0x4a   : > { %694 = vset.pattern.permute.xlu1 %v806_v19 }
  0x4b   : > { %442 = vperm.xlu1 %694, %v874_v0  }
  0x4c   : > { %695 = vset.pattern.permute.xlu2 %v807_v20 }
  0x4d   : > { %418 = vperm.xlu2 %695, %v874_v0  }
  0x53   : > { %697 = vset.pattern.permute.xlu1 %v808_v21 }
  0x54   : > { %454 = vperm.xlu1 %697, %v874_v0  }
  0x55   : > { %698 = vset.pattern.permute.xlu2 %v804_v17 }
  0x56   : > { %474 = vperm.xlu2 %698, %v874_v0  }
  0x71   : > { %v235_v22 = vpop.permute.xlu2 %234 }
  0x72   : > { %v241_v52 = vmul.f32 %v237_v31, %v235_v22  ;;  %v242_v53 = vmul.f32 %v238_v32, %v235_v22  ;;  %v243_v54 = vmul.f32 %v239_v33, %v235_v22  ;;  %v244_v55 = vmul.f32 %v240_v34, %v235_v22 }
  0x73   : > { %v269_v32 = vperm.slane %v906_v25, 7  ;;  %v270_v33 = vperm.slane %v908_v26, 7  ;;  %v271_v34 = vperm.slane %v910_v27, 7 }
  0x7a   : > { %v203_v39 = vpop.permute.xlu2 %202 }
  0x7b   : > { %v209_v10 = vmul.f32 %v205_v40, %v203_v39  ;;  %v210_v11 = vmul.f32 %v206_v41, %v203_v39  ;;  %v211_v12 = vmul.f32 %v207_v42, %v203_v39  ;;  %v212_v13 = vmul.f32 %v208_v43, %v203_v39 }
  0x83   : > { %v219_v22 = vpop.permute.xlu2 %218 }
  0x87   : > { %v171_v29 = vpop.permute.xlu1 %170  ;;  %v155_v30 = vpop.permute.xlu0 %154 }
  0x88   : > { %v177_v60 = vmul.f32 %v173_v35, %v171_v29  ;;  %v178_v61 = vmul.f32 %v174_v36, %v171_v29  ;;  %v179_v62 = vmul.f32 %v175_v37, %v171_v29  ;;  %v180_v63 = vmul.f32 %v176_v38, %v171_v29 }
  0x89   : > { %v272_v35 = vperm.slane %v912_v28, 7  ;;  %v225_v36 = vmul.f32 %v221_v56, %v219_v22  ;;  %v226_v37 = vmul.f32 %v222_v57, %v219_v22  ;;  %v228_v38 = vmul.f32 %v224_v59, %v219_v22 }
  0x8a   : > { %v181_v14 = vadd.f32 %v177_v60, %v155_v30  ;;  %v182_v15 = vadd.f32 %v178_v61, %v155_v30  ;;  %v183_v16 = vadd.f32 %v179_v62, %v155_v30  ;;  %v184_v17 = vadd.f32 %v180_v63, %v155_v30 }
  0x8b   : > { %v227_v30 = vmul.f32 %v223_v58, %v219_v22 }
  0x90   : > { %v187_v0 = vpop.permute.xlu1 %186  ;;  %v159_v9 = vpop.permute.xlu0 %158 }
  0x91   : > { %v193_v5 = vmul.f32 %v189_v44, %v187_v0  ;;  %v194_v6 = vmul.f32 %v190_v45, %v187_v0  ;;  %v195_v7 = vmul.f32 %v191_v46, %v187_v0  ;;  %v196_v8 = vmul.f32 %v192_v47, %v187_v0 }
  0x92   : > { %v165_v18 = vmul.f32 %v161_v48, %v159_v9  ;;  %v166_v19 = vmul.f32 %v162_v49, %v159_v9  ;;  %v167_v20 = vmul.f32 %v163_v50, %v159_v9  ;;  %v168_v21 = vmul.f32 %v164_v51, %v159_v9 }
  0x93   : > { %v197_v23 = vadd.f32 %v193_v5, %v181_v14  ;;  %v198_v24 = vadd.f32 %v194_v6, %v182_v15  ;;  %v199_v29 = vadd.f32 %v195_v7, %v183_v16  ;;  %v200_v31 = vadd.f32 %v196_v8, %v184_v17  ;;  %v303_v8 = vpop.permute.xlu2 %302 }
  0x94   : > { %v245_v39 = vadd.f32 %v241_v52, %v165_v18  ;;  %v246_v40 = vadd.f32 %v242_v53, %v166_v19  ;;  %v247_v41 = vadd.f32 %v243_v54, %v167_v20  ;;  %v248_v42 = vadd.f32 %v244_v55, %v168_v21 }
  0x95   : > { %v213_v43 = vadd.f32 %v209_v10, %v197_v23  ;;  %v214_v44 = vadd.f32 %v210_v11, %v198_v24  ;;  %v215_v45 = vadd.f32 %v211_v12, %v199_v29  ;;  %v216_v46 = vadd.f32 %v212_v13, %v200_v31 }
  0x97   : > { %v229_v54 = vadd.f32 %v225_v36, %v213_v43  ;;  %v230_v55 = vadd.f32 %v226_v37, %v214_v44  ;;  %v231_v59 = vadd.f32 %v227_v30, %v215_v45  ;;  %v232_v60 = vadd.f32 %v228_v38, %v216_v46 }
  0x99   : > { %v251_v47 = vpop.permute.xlu1 %250  ;;  %v267_v25 = vpop.permute.xlu0 %266 }
  0x9a   : > { %v257_v48 = vmul.f32 %v253_v1, %v251_v47  ;;  %v258_v26 = vmul.f32 %v254_v2, %v251_v47  ;;  %v259_v49 = vmul.f32 %v255_v3, %v251_v47  ;;  %v260_v27 = vmul.f32 %v256_v4, %v251_v47 }
  0x9b   : > { %v273_v50 = vmul.f32 %v269_v32, %v267_v25  ;;  %v274_v28 = vmul.f32 %v270_v33, %v267_v25  ;;  %v275_v51 = vmul.f32 %v271_v34, %v267_v25  ;;  %v276_v56 = vmul.f32 %v272_v35, %v267_v25  ;;  %v335_v16 = vpop.permute.xlu2 %334 }
  0x9c   : > { %v261_v57 = vadd.f32 %v257_v48, %v245_v39  ;;  %v262_v58 = vadd.f32 %v258_v26, %v246_v40  ;;  %v263_v52 = vadd.f32 %v259_v49, %v247_v41  ;;  %v264_v53 = vadd.f32 %v260_v27, %v248_v42 }
  0x9e   : > { %v277_v61 = vadd.f32 %v273_v50, %v261_v57  ;;  %v278_v62 = vadd.f32 %v274_v28, %v262_v58  ;;  %v279_v63 = vadd.f32 %v275_v51, %v263_v52  ;;  %v280_v0 = vadd.f32 %v276_v56, %v264_v53 }
  0xa0   : > { %v281_v1 = vadd.f32 %v277_v61, %v229_v54  ;;  %v282_v2 = vadd.f32 %v278_v62, %v230_v55  ;;  %v283_v3 = vadd.f32 %v279_v63, %v231_v59  ;;  %v284_v4 = vadd.f32 %v280_v0, %v232_v60 }
  0xa2   : > { %v285_v5 = vmul.f32 0.5, %v281_v1  ;;  %v286_v6 = vmul.f32 0.5, %v282_v2  ;;  %v287_v7 = vmul.f32 0.5, %v283_v3  ;;  %v288_v9 = vmul.f32 0.5, %v284_v4  ;;  %v319_v10 = vpop.permute.xlu1 %318  ;;  %v367_v60 = vpop.permute.xlu0 %366 }
  0xa3   : > { %v383_v52 = vpop.permute.xlu2 %382 }
  0xa4   : > { %700 = vtanh.f32 %v285_v5 }
  0xa5   : > { %702 = vtanh.f32 %v286_v6 }
  0xa6   : > { %704 = vtanh.f32 %v287_v7 }
  0xa7   : > { %706 = vtanh.f32 %v288_v9 }
  0xaa   : > { %v701_v11 = vpop.eup %700 }
  0xab   : > { %v703_v12 = vpop.eup %702  ;;  %v293_v13 = vadd.f32 1.0, %v701_v11  ;;  %v307_v34 = vpop.permute.xlu1 %306 }
  0xac   : > { %v705_v14 = vpop.eup %704  ;;  %v294_v15 = vadd.f32 1.0, %v703_v12 }
  0xad   : > { %v707_v17 = vpop.eup %706  ;;  %v295_v18 = vadd.f32 1.0, %v705_v14  ;;  %v946_v19 = vmul.f32 0.5, %v293_v13 }
  0xae   : > { %v296_v20 = vadd.f32 1.0, %v707_v17  ;;  %v948_v21 = vmul.f32 0.5, %v294_v15 }
  0xaf   : > { %v950_v22 = vmul.f32 0.5, %v295_v18  ;;  %v321_v23 = vperm.slane %v946_v19, 0  ;;  %v337_v24 = vperm.slane %v946_v19, 2  ;;  %v309_v29 = vperm.slane %v946_v19, 1 }
  0xb0   : > { %v955_v31 = vmul.f32 0.5, %v296_v20  ;;  %v322_v32 = vperm.slane %v948_v21, 0  ;;  %v338_v33 = vperm.slane %v948_v21, 2  ;;  %v310_v35 = vperm.slane %v948_v21, 1 }
  0xb1   : > { %v323_v36 = vperm.slane %v950_v22, 0  ;;  %v325_v37 = vmul.f32 %v321_v23, %v319_v10  ;;  %v339_v30 = vperm.slane %v950_v22, 2  ;;  %v341_v38 = vmul.f32 %v337_v24, %v335_v16 }
  0xb2   : > { %v324_v39 = vperm.slane %v955_v31, 0  ;;  %v326_v40 = vmul.f32 %v322_v32, %v319_v10  ;;  %v340_v41 = vperm.slane %v955_v31, 2  ;;  %v342_v42 = vmul.f32 %v338_v33, %v335_v16 }
  0xb3   : > { %v327_v43 = vmul.f32 %v323_v36, %v319_v10  ;;  %v329_v44 = vadd.f32 %v325_v37, %v303_v8  ;;  %v343_v45 = vmul.f32 %v339_v30, %v335_v16  ;;  %v311_v46 = vperm.slane %v950_v22, 1 }
  0xb4   : > { %v328_v47 = vmul.f32 %v324_v39, %v319_v10  ;;  %v330_v25 = vadd.f32 %v326_v40, %v303_v8  ;;  %v344_v48 = vmul.f32 %v340_v41, %v335_v16  ;;  %v312_v26 = vperm.slane %v955_v31, 1  ;;  %v351_v9 = vpop.permute.xlu1 %350 }
  0xb5   : > { %v331_v49 = vadd.f32 %v327_v43, %v303_v8  ;;  %v345_v27 = vadd.f32 %v341_v38, %v329_v44  ;;  %v313_v50 = vmul.f32 %v309_v29, %v307_v34  ;;  %v314_v28 = vmul.f32 %v310_v35, %v307_v34  ;;  %v419_v44 = vpop.permute.xlu2 %418 }
  0xb6   : > { %v332_v51 = vadd.f32 %v328_v47, %v303_v8  ;;  %v346_v56 = vadd.f32 %v342_v42, %v330_v25  ;;  %v315_v57 = vmul.f32 %v311_v46, %v307_v34  ;;  %v316_v58 = vmul.f32 %v312_v26, %v307_v34 }
  0xb7   : > { %v347_v53 = vadd.f32 %v343_v45, %v331_v49  ;;  %v385_v54 = vperm.slane %v946_v19, 5  ;;  %v386_v55 = vperm.slane %v948_v21, 5  ;;  %v387_v59 = vperm.slane %v950_v22, 5 }
  0xb8   : > { %v348_v61 = vadd.f32 %v344_v48, %v332_v51  ;;  %v388_v62 = vperm.slane %v955_v31, 5  ;;  %v369_v63 = vperm.slane %v946_v19, 3  ;;  %v370_v0 = vperm.slane %v948_v21, 3 }
  0xb9   : > { %v389_v1 = vmul.f32 %v385_v54, %v383_v52  ;;  %v390_v2 = vmul.f32 %v386_v55, %v383_v52  ;;  %v391_v3 = vmul.f32 %v387_v59, %v383_v52  ;;  %v371_v4 = vperm.slane %v950_v22, 3 }
  0xba   : > { %v392_v5 = vmul.f32 %v388_v62, %v383_v52  ;;  %v372_v6 = vperm.slane %v955_v31, 3  ;;  %v373_v7 = vmul.f32 %v369_v63, %v367_v60  ;;  %v374_v8 = vmul.f32 %v370_v0, %v367_v60 }
  0xbb   : > { %v375_v10 = vmul.f32 %v371_v4, %v367_v60  ;;  %v353_v11 = vperm.slane %v946_v19, 4  ;;  %v354_v12 = vperm.slane %v948_v21, 4  ;;  %v355_v13 = vperm.slane %v950_v22, 4 }
  0xbc   : > { %v376_v14 = vmul.f32 %v372_v6, %v367_v60  ;;  %v377_v15 = vadd.f32 %v373_v7, %v313_v50  ;;  %v378_v16 = vadd.f32 %v374_v8, %v314_v28  ;;  %v356_v17 = vperm.slane %v955_v31, 4 }
  0xbd   : > { %v379_v18 = vadd.f32 %v375_v10, %v315_v57  ;;  %v357_v20 = vmul.f32 %v353_v11, %v351_v9  ;;  %v358_v23 = vmul.f32 %v354_v12, %v351_v9  ;;  %v359_v24 = vmul.f32 %v355_v13, %v351_v9  ;;  %v443_v45 = vpop.permute.xlu1 %442  ;;  %v423_v12 = vpop.permute.xlu0 %422 }
  0xbe   : > { %v380_v29 = vadd.f32 %v376_v14, %v316_v58  ;;  %v393_v32 = vadd.f32 %v389_v1, %v377_v15  ;;  %v394_v33 = vadd.f32 %v390_v2, %v378_v16  ;;  %v360_v34 = vmul.f32 %v356_v17, %v351_v9  ;;  %v475_v58 = vpop.permute.xlu2 %474 }
  0xbf   : > { %v395_v35 = vadd.f32 %v391_v3, %v379_v18  ;;  %v361_v36 = vadd.f32 %v357_v20, %v345_v27  ;;  %v362_v19 = vadd.f32 %v358_v23, %v346_v56  ;;  %v363_v37 = vadd.f32 %v359_v24, %v347_v53 }
  0xc0   : > { %v396_v21 = vadd.f32 %v392_v5, %v380_v29  ;;  %v364_v30 = vadd.f32 %v360_v34, %v348_v61 }
  0xc1   : > { %v397_v22 = vadd.f32 %v393_v32, %v361_v36  ;;  %v398_v38 = vadd.f32 %v394_v33, %v362_v19  ;;  %v399_v39 = vadd.f32 %v395_v35, %v363_v37 }
  0xc2   : > { %v400_v40 = vadd.f32 %v396_v21, %v364_v30 }
  0xc3   : > { %v401_v41 = vmul.f32 0.5, %v397_v22  ;;  %v402_v31 = vmul.f32 0.5, %v398_v38  ;;  %v403_v42 = vmul.f32 0.5, %v399_v39 }
  0xc4   : > { %v404_v43 = vmul.f32 0.5, %v400_v40 }
  0xc5   : > { %708 = vtanh.f32 %v401_v41 }
  0xc6   : > { %710 = vtanh.f32 %v402_v31  ;;  %v455_v63 = vpop.permute.xlu1 %454 }
  0xc7   : > { %712 = vtanh.f32 %v403_v42 }
  0xc8   : > { %714 = vtanh.f32 %v404_v43 }
  0xcb   : > { %v709_v46 = vpop.eup %708 }
  0xcc   : > { %v711_v47 = vpop.eup %710  ;;  %v409_v25 = vadd.f32 1.0, %v709_v46 }
  0xcd   : > { %v713_v48 = vpop.eup %712  ;;  %v410_v26 = vadd.f32 1.0, %v711_v47 }
  0xce   : > { %v715_v49 = vpop.eup %714  ;;  %v411_v27 = vadd.f32 1.0, %v713_v48  ;;  %v413_v50 = vmul.f32 0.5, %v409_v25 }
  0xcf   : > { %v412_v28 = vadd.f32 1.0, %v715_v49  ;;  %v414_v51 = vmul.f32 0.5, %v410_v26 }
  0xd0   : > { %v415_v56 = vmul.f32 0.5, %v411_v27  ;;  %v445_v57 = vmul.f32 %v443_v45, %v413_v50  ;;  %v477_v52 = vrot.slane %v413_v50, 3  ;;  %v457_v53 = vrot.slane %v413_v50, 2 }
  0xd1   : > { %v416_v54 = vmul.f32 0.5, %v412_v28  ;;  %v446_v55 = vmul.f32 %v443_v45, %v414_v51  ;;  %v478_v59 = vrot.slane %v414_v51, 3  ;;  %v458_v60 = vrot.slane %v414_v51, 2 }
  0xd2   : > { %v447_v61 = vmul.f32 %v443_v45, %v415_v56  ;;  %v479_v62 = vrot.slane %v415_v56, 3  ;;  %v485_v2 = vmul.f32 %v477_v52, %v475_v58  ;;  %v449_v3 = vadd.f32 %v445_v57, %v419_v44 }
  0xd3   : > { %v448_v0 = vmul.f32 %v443_v45, %v416_v54  ;;  %v480_v1 = vrot.slane %v416_v54, 3  ;;  %v486_v4 = vmul.f32 %v478_v59, %v475_v58  ;;  %v450_v5 = vadd.f32 %v446_v55, %v419_v44 }
  0xd4   : > { %v459_v6 = vrot.slane %v415_v56, 2  ;;  %v460_v7 = vrot.slane %v416_v54, 2  ;;  %v451_v8 = vadd.f32 %v447_v61, %v419_v44  ;;  %v465_v10 = vmul.f32 %v457_v53, %v455_v63 }
  0xd5   : > { %v452_v9 = vadd.f32 %v448_v0, %v419_v44  ;;  %v466_v11 = vmul.f32 %v458_v60, %v455_v63  ;;  %v429_v15 = vrot.slane %v413_v50, 1  ;;  %v430_v16 = vrot.slane %v414_v51, 1 }
  0xd6   : > { %v467_v13 = vmul.f32 %v459_v6, %v455_v63  ;;  %v468_v14 = vmul.f32 %v460_v7, %v455_v63  ;;  %v487_v17 = vmul.f32 %v479_v62, %v475_v58  ;;  %v488_v18 = vmul.f32 %v480_v1, %v475_v58 }
  0xd7   : > { %v431_v20 = vrot.slane %v415_v56, 1  ;;  %v432_v23 = vrot.slane %v416_v54, 1  ;;  %v469_v24 = vadd.f32 %v465_v10, %v449_v3  ;;  %v470_v29 = vadd.f32 %v466_v11, %v450_v5 }
  0xd8   : > { %v437_v32 = vmul.f32 %v429_v15, %v423_v12  ;;  %v438_v33 = vmul.f32 %v430_v16, %v423_v12  ;;  %v471_v34 = vadd.f32 %v467_v13, %v451_v8  ;;  %v472_v35 = vadd.f32 %v468_v14, %v452_v9 }
  0xd9   : > { %v439_v36 = vmul.f32 %v431_v20, %v423_v12  ;;  %v440_v19 = vmul.f32 %v432_v23, %v423_v12  ;;  %v527_v51 = vlaneseq }
  0xda   : > { %v489_v37 = vadd.f32 %v485_v2, %v437_v32  ;;  %v490_v21 = vadd.f32 %v486_v4, %v438_v33 }
  0xdb   : > { %v491_v30 = vadd.f32 %v487_v17, %v439_v36  ;;  %v492_v22 = vadd.f32 %v488_v18, %v440_v19  ;;  %vm529_vm3 = vcmp.lt.s32.totalorder %v527_v51, 512 }
  0xdc   : > { %v493_v38 = vadd.f32 %v489_v37, %v469_v24  ;;  %v494_v39 = vadd.f32 %v490_v21, %v470_v29 }
  0xdd   : > { %v495_v40 = vadd.f32 %v491_v30, %v471_v34  ;;  %v496_v41 = vadd.f32 %v492_v22, %v472_v35 }
  0xde   : > { %v497_v31 = vmul.f32 0.5, %v493_v38  ;;  %v498_v42 = vmul.f32 0.5, %v494_v39 }
  0xdf   : > { %v499_v43 = vmul.f32 0.5, %v495_v40  ;;  %v500_v44 = vmul.f32 0.5, %v496_v41 }
  0xe0   : > { %716 = vtanh.f32 %v497_v31 }
  0xe1   : > { %718 = vtanh.f32 %v498_v42 }
  0xe2   : > { %720 = vtanh.f32 %v499_v43 }
  0xe3   : > { %722 = vtanh.f32 %v500_v44 }
  0xe6   : > { %v717_v45 = vpop.eup %716 }
  0xe7   : > { %v719_v46 = vpop.eup %718  ;;  %v505_v25 = vadd.f32 1.0, %v717_v45 }
  0xe8   : > { %v721_v47 = vpop.eup %720  ;;  %v506_v48 = vadd.f32 1.0, %v719_v46 }
  0xe9   : > { %v723_v26 = vpop.eup %722  ;;  %v507_v49 = vadd.f32 1.0, %v721_v47  ;;  %v509_v56 = vmul.f32 0.5, %v505_v25 }
  0xea   : > { %v508_v27 = vadd.f32 1.0, %v723_v26  ;;  %v510_v50 = vmul.f32 0.5, %v506_v48 }
  0xeb   : > { %v511_v28 = vmul.f32 0.5, %v507_v49 }
  0xec   : > { %v512_v57 = vmul.f32 0.5, %v508_v27  ;;  %v517_v58 = vrot.slane %v510_v50, 7 }
  0xed   : > { %v518_v52 = vrot.slane %v511_v28, 6 }
  0xee   : > { %v519_v53 = vrot.slane %v512_v57, 5  ;;  %v521_v54 = vsel %vm520_vm0, %v509_v56, %v517_v58 }
  0xf0   : > { %v523_v55 = vsel %vm522_vm1, %v518_v52, %v519_v53 }
  0xf1   : > { %v525_v59 = vsel %vm524_vm2, %v521_v54, %v523_v55 }
  0xf2   : > { %531 = vst.msk [vmem:[%s137_s6] sm:$0xf] %vm529_vm3, %v525_v59 }
  0xf3   : > { %751 = shalt.err (!%p748_p3)
}
  0xf4   : > { %618 = dma.vmem_to_hbm [thread:$0]  (%p861_p5), %s546_s7, 64, %s548_s8, %s533_s13  }
  0xf5 PF: > { %p624_p4 = scmp.ge.s32.totalorder %s786_s12, 2  ;;  %s559_s25 = sand.u32 1, %s774_s9  }
  0xf6   : > { %s560_s26 = scalar_lea.sflag [#allocation3], %s559_s25 }
  0xf7   : > { %p621_p7 = pnand %p624_p4, %p865_p6 }
  0xf9   : > { %p622_p8 = pneg %p621_p7 }
  0xfb   : > { %769 = dma.done.wait (%p622_p8), %s560_s26, 64  }
  0xfc   : > { %771 = vsyncadd (%p622_p8), %s560_s26, 4294967232  ;;  %p12_p9 = scmp.ge.s32.totalorder %s847_s15, 4   ;;  %s1019_s9 = smov %s778_s10 }
  0xfd   : > { %s1020_s10 = smov %s782_s11  ;;  %s1021_s11 = smov %s859_s18 }
  0xfe   : > { %s1022_s12 = smov %s847_s15  ;;  %14 = sbr.rel (!%p12_p9) target bundleno = 3 (0x3), region = 63 }
 0x103   :  { %566 = vsyncpa [#allocation3], 1 }
 0x104   :  { %568 = vsyncpa [#allocation3 + $0x1], 1 }

</bundles_post_ra>
